<compile_context>
chip_gen: v7x
topology: tpu7x:2x2x1
jax: 0.10.0
libtpu: 0.0.40
codegen_flags: <defaults>
</compile_context>

<pallas_src>
import functools

import jax
import jax.numpy as jnp
from jax import lax
from jax.experimental import pallas as pl
from jax.experimental.pallas import tpu as pltpu


# ----------------------------------------------------------------------------
# Pallas kernel: fused (weight @ patches^T) + bias + ReLU, lane-dense output
# ----------------------------------------------------------------------------
def _conv_gemm_bias_relu_kernel(w_ref, b_ref, p_ref, o_ref):
    # w_ref: (OC, Kp)     bf16 reshaped conv weight (zero-padded along K)
    # b_ref: (OC, 1)      f32 conv bias
    # p_ref: (1, Kp, TM)  bf16 transposed im2col patch tile
    # o_ref: (1, OC, TM)  f32 output tile -- lane axis = TM (128-multiple)
    acc = jnp.dot(w_ref[...], p_ref[0],
                  preferred_element_type=jnp.float32)     # (OC, TM) f32 MXU
    acc = acc + b_ref[...]                                # lane-broadcast bias
    o_ref[0] = jnp.maximum(acc, 0.0).astype(o_ref.dtype)  # fused ReLU


def _pick_tm(m_per_image, max_tm=4096):
    """Largest lane-dense tile for the per-image spatial extent M.

    Prefers the biggest 128-multiple tile that divides M exactly (zero
    padding, fewest grid steps).  For small ragged M, uses a single padded
    tile.  For large ragged M, falls back to 512 with <512 lanes of padding.
    """
    for t in (4096, 2048, 1024, 512, 256, 128):
        if t <= max_tm and m_per_image % t == 0:
            return t
    if m_per_image <= max_tm:
        return int(pl.cdiv(m_per_image, 128) * 128)   # one padded tile
    return 512


# ----------------------------------------------------------------------------
# ConvBlock forward (glue: spatial pad + transposed-layout im2col in bf16)
# ----------------------------------------------------------------------------
def conv_block_forward(x, weight, bias, *, stride, padding):
    """x: (N, C, H, W); weight: (OC, C, KH, KW); bias: (OC,). Returns NCHW f32."""
    N, C, H, W = x.shape
    OC, _, KH, KW = weight.shape
    K = C * KH * KW

    # Spatial zero-padding (PyTorch Conv2d `padding`), cast once to bf16.
    x_pad = jnp.pad(
        x, ((0, 0), (0, 0), (padding, padding), (padding, padding))
    ).astype(jnp.bfloat16)
    Hp, Wp = H + 2 * padding, W + 2 * padding
    OH = (Hp - KH) // stride + 1
    OW = (Wp - KW) // stride + 1
    M = OH * OW

    TM = _pick_tm(M)
    Mp = int(pl.cdiv(M, TM) * TM)      # == M when TM divides M (demo shapes)
    Kp = int(pl.cdiv(K, 16) * 16)      # bf16 sublane-dense contraction dim

    # im2col emitted directly in the transposed (N, Kp, M) layout the GEMM
    # needs: patches[n, c*KH*KW + kh*KW + kw, oh*OW + ow]
    #      = x_pad[n, c, oh*stride + kh, ow*stride + kw]
    taps = []
    for kh in range(KH):
        for kw in range(KW):
            taps.append(
                x_pad[:, :,
                      kh: kh + (OH - 1) * stride + 1: stride,
                      kw: kw + (OW - 1) * stride + 1: stride])   # (N, C, OH, OW)
    patches = jnp.stack(taps, axis=2)                 # (N, C, KH*KW, OH, OW)
    patches = patches.reshape(N, K, M)                # adjacent-dim merges only
    patches = jnp.pad(patches, ((0, 0), (0, Kp - K), (0, Mp - M)))

    # Parameters: K order of weight.reshape matches the patch K order (c,kh,kw).
    w2d = weight.reshape(OC, K).astype(jnp.bfloat16)
    w2d = jnp.pad(w2d, ((0, 0), (0, Kp - K)))         # zero pad => no-op in dot
    b2d = bias.reshape(OC, 1).astype(jnp.float32)

    grid = (N, Mp // TM)              # N axis parallel -> both v7x TCs busy

    # Explicit VMEM budget (matters on v7x: 64 MiB physical / 32 MiB scoped
    # default). Double-buffered streams (patch in, out tile) + resident params.
    work_set = 2 * (Kp * TM * 2 + OC * TM * 4) + OC * Kp * 2 + OC * 4
    vmem_limit = int(max(16 * 1024 * 1024, min(64 * 1024 * 1024, 8 * work_set)))

    out = pl.pallas_call(
        _conv_gemm_bias_relu_kernel,
        out_shape=jax.ShapeDtypeStruct((N, OC, Mp), jnp.float32),
        grid_spec=pltpu.PrefetchScalarGridSpec(
            num_scalar_prefetch=0,
            grid=grid,
            in_specs=[
                pl.BlockSpec((OC, Kp), lambda n, m: (0, 0)),        # weight (resident)
                pl.BlockSpec((OC, 1), lambda n, m: (0, 0)),         # bias (resident)
                pl.BlockSpec((1, Kp, TM), lambda n, m: (n, 0, m)),  # patch tile
            ],
            out_specs=pl.BlockSpec((1, OC, TM), lambda n, m: (n, 0, m)),
        ),
        compiler_params=pltpu.CompilerParams(
            dimension_semantics=("parallel", "parallel"),
            vmem_limit_bytes=vmem_limit,
        ),
    )(w2d, b2d, patches)

    out = out[:, :, :M]                       # drop M padding (no-op here)
    return out.reshape(N, OC, OH, OW)         # pure reshape: already NCHW order


# ----------------------------------------------------------------------------
# Demo / sanity check
# ----------------------------------------------------------------------------
if __name__ == "__main__":
    key = jax.random.PRNGKey(0)
    k_x, k_w, k_b = jax.random.split(key, 3)

    # ConvBlock(input_channels=4, out_channels=8, config=(3, 1, 1))
    N, C, H, W = 2, 4, 16, 16
    OC, KH, KW = 8, 3, 3
    stride, padding = 1, 1

    x = jax.random.normal(k_x, (N, C, H, W), dtype=jnp.float32)
    fan_in = C * KH * KW
    bound = 1.0 / (fan_in ** 0.5)
    weight = jax.random.uniform(k_w, (OC, C, KH, KW), jnp.float32, -bound, bound)
    bias = jax.random.uniform(k_b, (OC,), jnp.float32, -bound, bound)

    fwd = jax.jit(functools.partial(conv_block_forward, stride=stride,
                                    padding=padding))
    out = jax.block_until_ready(fwd(x, weight, bias))

    # Reference check against XLA conv (f32). bf16 MXU operands with f32
    # accumulation -> relaxed tolerance (silent unless it fails).
    ref = lax.conv_general_dilated(
        x, weight, window_strides=(stride, stride),
        padding=[(padding, padding), (padding, padding)],
        dimension_numbers=("NCHW", "OIHW", "NCHW"))
    ref = jnp.maximum(ref + bias[None, :, None, None], 0.0)
    assert out.shape == (N, OC, H, W)
    assert jnp.allclose(out, ref, atol=5e-2, rtol=5e-2)

    print("KERNEL_OK")
</pallas_src>

<mosaic_0001>
module attributes {stable_mosaic.version = 11 : i64} {
  func.func @_conv_gemm_bias_relu_kernel(%arg0: i32, %arg1: i32, %arg2: memref<8x48xbf16, #tpu.memory_space<vmem>>, %arg3: memref<8x1xf32, #tpu.memory_space<vmem>>, %arg4: memref<1x48x256xbf16, #tpu.memory_space<vmem>>, %arg5: memref<1x8x256xf32, #tpu.memory_space<vmem>>) attributes {dimension_semantics = [#tpu.dimension_semantics<parallel>, #tpu.dimension_semantics<parallel>], iteration_bounds = array<i64: 2, 1>, scalar_prefetch = 0 : i64, scratch_operands = 0 : i64, tpu.core_type = #tpu.core_type<tc>, window_params = [{pipeline_mode = #tpu.pipeline_mode<synchronous>, transform_indices = @transform_0, window_bounds = array<i64: 8, 48>}, {pipeline_mode = #tpu.pipeline_mode<synchronous>, transform_indices = @transform_1, window_bounds = array<i64: 8, 1>}, {transform_indices = @transform_2, window_bounds = array<i64: 1, 48, 256>}, {transform_indices = @transform_3, window_bounds = array<i64: 1, 8, 256>}]} {
    %c0 = arith.constant 0 : index
    %c0_0 = arith.constant 0 : index
    %0 = vector.load %arg2[%c0, %c0_0] : memref<8x48xbf16, #tpu.memory_space<vmem>>, vector<8x48xbf16>
    %c0_1 = arith.constant 0 : index
    %c0_2 = arith.constant 0 : index
    %c0_3 = arith.constant 0 : index
    %1 = vector.load %arg4[%c0_1, %c0_2, %c0_3] : memref<1x48x256xbf16, #tpu.memory_space<vmem>>, vector<1x48x256xbf16>
    %2 = vector.shape_cast %1 : vector<1x48x256xbf16> to vector<48x256xbf16>
    %cst = arith.constant dense<0.000000e+00> : vector<8x256xf32>
    %3 = tpu.matmul %0, %2, %cst {dimension_numbers = #tpu.dot_dimension_numbers<[1], [0], [0], [1], [0, 0, 1, 1], [], []>} : vector<8x48xbf16>, vector<48x256xbf16>, vector<8x256xf32> -> vector<8x256xf32>
    %c0_4 = arith.constant 0 : index
    %c0_5 = arith.constant 0 : index
    %4 = vector.load %arg3[%c0_4, %c0_5] : memref<8x1xf32, #tpu.memory_space<vmem>>, vector<8x1xf32>
    %5 = vector.broadcast %4 : vector<8x1xf32> to vector<8x256xf32>
    %6 = arith.addf %3, %5 : vector<8x256xf32>
    %cst_6 = arith.constant 0.000000e+00 : f32
    %7 = vector.broadcast %cst_6 : f32 to vector<8x256xf32>
    %8 = arith.maximumf %6, %7 : vector<8x256xf32>
    %c0_7 = arith.constant 0 : index
    %c0_8 = arith.constant 0 : index
    %c0_9 = arith.constant 0 : index
    %9 = vector.load %arg5[%c0_7, %c0_8, %c0_9] : memref<1x8x256xf32, #tpu.memory_space<vmem>>, vector<1x8x256xf32>
    %10 = vector.shape_cast %9 : vector<1x8x256xf32> to vector<8x256xf32>
    %11 = vector.shape_cast %8 : vector<8x256xf32> to vector<1x8x256xf32>
    tpu.vector_store %arg5[%c0_7, %c0_8, %c0_9], %11 {strides = array<i32>} : memref<1x8x256xf32, #tpu.memory_space<vmem>>, vector<1x8x256xf32>,
    return
  }
  func.func @transform_0(%arg0: i32, %arg1: i32) -> (i32, i32) {
    %c0_i32 = arith.constant 0 : i32
    %c0_i32_0 = arith.constant 0 : i32
    %c0_i32_1 = arith.constant 0 : i32
    return %c0_i32, %c0_i32_0 : i32, i32
  }
  func.func @transform_1(%arg0: i32, %arg1: i32) -> (i32, i32) {
    %c0_i32 = arith.constant 0 : i32
    %c0_i32_0 = arith.constant 0 : i32
    %c0_i32_1 = arith.constant 0 : i32
    return %c0_i32, %c0_i32_0 : i32, i32
  }
  func.func @transform_2(%arg0: i32, %arg1: i32) -> (i32, i32, i32) {
    %c0_i32 = arith.constant 0 : i32
    %c0_i32_0 = arith.constant 0 : i32
    return %arg0, %c0_i32, %arg1 : i32, i32, i32
  }
  func.func @transform_3(%arg0: i32, %arg1: i32) -> (i32, i32, i32) {
    %c0_i32 = arith.constant 0 : i32
    %c0_i32_0 = arith.constant 0 : i32
    return %arg0, %c0_i32, %arg1 : i32, i32, i32
  }
}

</mosaic_0001>

<bundles_post_ra>
// kernel: conv_block_forward.1
= control target key start
LH: loop header
LB: loop body
LE: loop exit
PB: predicated region body
PF: predicated region fallthrough
CT: control target
= control target key end

     0   :  { %s489_s12 = smov 0   ;;  %s491_s13 = smov 0   ;;  %s528_s0 = inlined_call_operand.vmem [shape: bf16[8,48], index: 0, kind: input, shape index: {}]   ;;  %s529_s1 = inlined_call_operand.vmem [shape: f32[8,1], index: 1, kind: input, shape index: {}]   ;;  %s530_s2 = inlined_call_operand.vmem [shape: bf16[2,48,256], index: 2, kind: input, shape index: {}]   ;;  %s531_s3 = inlined_call_operand.vmem [shape: f32[2,8,256], index: 3, kind: output, shape index: {}]  }
   0x1   :  { %s493_s14 = smov 0  }
   0x2 LB: > { %s25_s15 = sadd.s32 1, %s462_s13  ;;  %p394_p0 = scmp.ge.s32.totalorder %s466_s14, 1  ;;  %s466_s14 = sphi %s493_s14, %s13_s14   ;;  %s462_s13 = sphi %s491_s13, %s533_s13   ;;  %s458_s12 = sphi %s489_s12, %s532_s12  }
   0x3   : > { %p27_p1 = scmp.ge.s32.totalorder %s25_s15, 2  ;;  %p158_p2 = scmp.lt.s32.totalorder %s466_s14, 3 }
   0x5   : > { %s535_s15 = smov (%p27_p1, %s25_s15), 0  ;;  %p159_p3 = pnand %p394_p0, %p158_p2 }
   0x6   : > { %p191_p4 = scmp.lt.s32.totalorder (!%p159_p3), %s458_s12, 1  ;;  %v218_v0 = vld [vmem:[%s529_s1] sm:$0xff] (!%p159_p3)  ;;  %v468_v1 = vmov (!%p159_p3), 0   ;;  %vm254_vm0 = vcmask (!%p159_p3), 392192  }
   0x7   : > { %162 = sbr.rel (%p159_p3) target bundleno = 249 (0xf9), region = 32  ;;  %290 = vmatprep.mubr.bf16.mxu0 (!%p159_p3), %v468_v1  ;;  %434 = vset.pattern.permute.xlu0 (!%p159_p3), %v468_v1  ;;  %v211_v8 = vld [vmem:[%s528_s0] sm:$0xf] (!%p159_p3) }
   0x8   : > { %221 = vperm.xlu0 (!%p159_p3), %434, %v218_v0  }
   0xe   : > { %s537_s12 = smov (!%p191_p4, %s458_s12), 1 }
   0xf   : > { %s408_s18 = smul.u32 48, %s537_s12  ;;  %s407_s24 = sshll.u32 %s537_s12, 4 }
  0x10   : > { %s208_s27 = scalar_lea.vmem %s531_s3, %s407_s24 }
  0x11   : > { %s198_s21 = scalar_lea.vmem %s530_s2, %s408_s18 }
  0x12   : > { %v435_v2 = vld [vmem:[%s198_s21 + $0x4] ss:$8 sps:$4 sm:$0xff]   ;;  %v437_v3 = vld [vmem:[%s198_s21] ss:$8 sps:$4 sm:$0xff]   ;;  %v438_v4 = vld [vmem:[%s198_s21 + $0x14] ss:$8 sps:$4 sm:$0xff]  }
  0x13   : > { %258 = vmatprep.subr.bf16.mxu0 %v435_v2  ;;  %v440_v5 = vld [vmem:[%s198_s21 + $0x10] ss:$8 sps:$4 sm:$0xff]   ;;  %v441_v6 = vld [vmem:[%s198_s21 + $0x24] ss:$8 sps:$4 sm:$0xff]   ;;  %v443_v7 = vld [vmem:[%s198_s21 + $0x20] ss:$8 sps:$4 sm:$0xff]  }
  0x14   : > { %259 = vmatpush1.bf16.msra.mxu0 %v437_v3 }
  0x15   : > { %260 = vmatprep.subr.bf16.mxu0 %v438_v4 }
  0x18   : > { %261 = vmatpush1.bf16.msra.mxu0 %v440_v5 }
  0x19   : > { %262 = vmatprep.subr.bf16.mxu0 %v441_v6 }
  0x1c   : > { %263 = vmatpush1.bf16.msra.mxu0 %v443_v7 }
  0x1f   : > { %404 = vmatmul.mubr.msk.bf16.vlgmr.msra.gmra.mrb[0].mxu0 %vm254_vm0, %v211_v8 }
  0x87   : > { %v222_v9 = vpop.permute.xlu0 %221 }
  0xf2   : > { %v292_v10 = vpop.f32.mrb[0].mxu0 }
  0xf3   : > { %v293_v11 = vadd.f32 %v292_v10, %v222_v9  ;;  %v294_v12 = vpop.f32.mrb[1].mxu0 }
  0xf4   : > { %v295_v13 = vadd.f32 %v294_v12, %v222_v9  ;;  %v296_v14 = vpop.f32.mrb[2].mxu0 }
  0xf5   : > { %v299_v15 = vmax.f32 %v293_v11, 0.0  ;;  %v297_v16 = vpop.f32.mrb[3].mxu0 }
  0xf6   : > { %v300_v17 = vmax.f32 %v295_v13, 0.0 }
  0xf7   : > { %301 = vst [vmem:[%s208_s27] sm:$0xff] %v299_v15 }
  0xf8   : > { %302 = vst [vmem:[%s208_s27 + $0x8] sm:$0xff] %v300_v17 }
  0xf9 PF: > { %s13_s14 = sadd.s32 1, %s466_s14   ;;  %s532_s12 = smov %s462_s13 }
  0xfa   : > { %p10_p5 = scmp.ge.s32.totalorder %s13_s14, 4   ;;  %s533_s13 = smov %s535_s15 }
  0xfc   :  { %12 = sbr.rel (!%p10_p5) target bundleno = 2 (0x2), region = 62 }

</bundles_post_ra>
